<compile_context>
chip_gen: v7x
topology: tpu7x:2x2x1
jax: 0.10.0
libtpu: 0.0.40
codegen_flags: <defaults>
</compile_context>

<pallas_src>
import functools

import jax
import jax.numpy as jnp
from jax.experimental import pallas as pl
from jax.experimental.pallas import tpu as pltpu

_MIB = 1024 * 1024
# Assume up to 2 TensorCores per chip (v7x); target >= 2 tiles per core so
# each core's pipeline stays double-buffered whenever there is enough work.
_MIN_TILES = 4


def _vmem_budgets():
    """Generation-aware (tile budget, scoped-vmem cap) in bytes."""
    try:
        vmem_capacity = int(pltpu.get_tpu_info().vmem_capacity_bytes)
    except Exception:  # be robust if the query is unavailable
        vmem_capacity = 64 * _MIB  # conservative: assume v7x
    if vmem_capacity >= 100 * _MIB:    # v5e / v6e: 128 MiB physical VMEM
        return 90 * _MIB, 100 * _MIB
    return 40 * _MIB, 48 * _MIB        # v7x: 64 MiB physical VMEM


def _align_tile_rows(tr, rows, sublane):
    """Clamp/round tr to a legal block size: equal to rows, or a positive
    multiple of the dtype's sublane packing (8/16/32)."""
    tr = max(1, min(int(tr), rows))
    if tr == rows:
        return tr
    aligned = (tr // sublane) * sublane
    if aligned >= sublane:
        return aligned
    # Requested tile smaller than one sublane group: use one group if the
    # array is big enough, otherwise take the whole (tiny) array.
    return sublane if rows > sublane else rows


def _select_tile_rows(rows, hidden, itemsize, vmem_tile_budget_bytes,
                      target_rows=1024):
    """Largest sublane-aligned row tile fitting the VMEM budget, split into at
    least _MIN_TILES grid steps when there is enough work."""
    # Per-row VMEM estimate: double-buffered input + output tiles plus f32
    # elementwise temporaries. The in-kernel f32 astype is a no-op for f32
    # inputs and Mosaic fuses most elementwise temps, so ~1 f32 temp for f32
    # inputs and ~2 for narrower dtypes (the widened copy is real there).
    n_f32_temps = 1 if itemsize >= 4 else 2
    per_row_bytes = hidden * (4 * itemsize + 4 * n_f32_temps)
    max_rows_by_vmem = max(8, vmem_tile_budget_bytes // per_row_bytes)

    sublane = max(8, 32 // itemsize)
    tr = int(min(target_rows, rows, max_rows_by_vmem))
    tr = _align_tile_rows(tr, rows, sublane)

    # Guarantee >= _MIN_TILES grid steps (>= 2 per TensorCore on v7x) when the
    # problem is big enough, so every core overlaps DMA with compute.
    if pl.cdiv(rows, tr) < _MIN_TILES and rows >= _MIN_TILES * sublane:
        split = ((pl.cdiv(rows, _MIN_TILES) + sublane - 1) // sublane) * sublane
        tr = _align_tile_rows(min(tr, split), rows, sublane)

    return tr, per_row_bytes, sublane


def _layernorm_kernel(x_ref, gamma_ref, beta_ref, o_ref, *, eps, hidden):
    """Standard path: x_ref is a (TR, H) tile; gamma/beta are (1, H)."""
    x = x_ref[...].astype(jnp.float32)

    # Fused one-pass statistics from a single load; biased variance
    # E[x^2] - mean^2, clamped at 0 against catastrophic cancellation.
    inv_h = jnp.float32(1.0 / hidden)
    s1 = jnp.sum(x, axis=-1, keepdims=True)
    s2 = jnp.sum(x * x, axis=-1, keepdims=True)
    mean = s1 * inv_h
    var = jnp.maximum(s2 * inv_h - mean * mean, 0.0)
    inv_std = jax.lax.rsqrt(var + eps)

    g = gamma_ref[...].astype(jnp.float32)
    b = beta_ref[...].astype(jnp.float32)
    o_ref[...] = ((x - mean) * inv_std * g + b).astype(o_ref.dtype)


def _layernorm_grouped_kernel(x_ref, gamma_ref, beta_ref, o_ref, *, eps,
                              hidden, group):
    """Lane-dense small-H path: x_ref is a (TR, group*hidden) tile in which
    every 128-lane row packs `group` original rows; gamma/beta are the
    H-periodic tiled (1, group*hidden) parameters. Loads/stores stay
    unmasked full-lane vld/vst; only the reduction uses a (TR, group, hidden)
    in-kernel view."""
    x = x_ref[...].astype(jnp.float32)
    tr = x.shape[0]
    x3 = x.reshape(tr, group, hidden)

    inv_h = jnp.float32(1.0 / hidden)
    s1 = jnp.sum(x3, axis=-1, keepdims=True)
    s2 = jnp.sum(x3 * x3, axis=-1, keepdims=True)
    mean = s1 * inv_h
    var = jnp.maximum(s2 * inv_h - mean * mean, 0.0)
    inv_std = jax.lax.rsqrt(var + eps)

    y = ((x3 - mean) * inv_std).reshape(tr, group * hidden)
    g = gamma_ref[...].astype(jnp.float32)
    b = beta_ref[...].astype(jnp.float32)
    # TODO(synk): if a v7x bundle dump shows the XLU reduce / VALU mul slot
    # saturating, route s1/s2 through the idle MXU (x @ block-diagonal ones
    # matrix) instead of the in-kernel reshape + jnp.sum.
    o_ref[...] = (y * g + b).astype(o_ref.dtype)


def layer_norm(x, gamma, beta, eps=1e-5, tile_rows=None):
    """x: (batch, seq, hidden); gamma, beta: (hidden,). Same shape/dtype out."""
    B, S, H = x.shape
    rows = B * S
    itemsize = jnp.dtype(x.dtype).itemsize

    # Lane-dense layout for small hidden: fold G = 128 // H rows into each
    # 128-lane row so HBM<->VMEM traffic uses unmasked full-lane vld/vst.
    group = 1
    if H < 128 and 128 % H == 0 and rows % (128 // H) == 0:
        group = 128 // H
    rows2 = rows // group
    H2 = group * H

    x2 = x.reshape(rows2, H2)
    gamma1 = gamma.reshape(-1)
    beta1 = beta.reshape(-1)
    if group > 1:
        gamma1 = jnp.tile(gamma1, group)
        beta1 = jnp.tile(beta1, group)
    gamma2 = gamma1.reshape(1, H2)
    beta2 = beta1.reshape(1, H2)

    vmem_tile_budget, vmem_cap = _vmem_budgets()
    tr, per_row_bytes, sublane = _select_tile_rows(
        rows2, H2, itemsize, vmem_tile_budget)
    if tile_rows is not None:
        # Manual override: still enforce sublane alignment + the VMEM budget.
        max_rows_by_vmem = max(sublane, vmem_tile_budget // per_row_bytes)
        tr = _align_tile_rows(min(int(tile_rows), max_rows_by_vmem), rows2,
                              sublane)

    # cdiv grid: the final partial tile (rows2 % tr != 0) has its OOB writes
    # masked by Pallas; rows are independent so padded reads cannot corrupt
    # valid rows (NOTE: this invariant must hold for any future change that
    # adds cross-row reductions).
    grid = (pl.cdiv(rows2, tr),)

    # Scoped VMEM sized to the chosen tile (double-buffered I/O + f32 temps),
    # capped per generation (48 MiB on v7x's 64 MiB VMEM, 100 MiB otherwise).
    vmem_limit_bytes = int(min(vmem_cap,
                               max(16 * _MIB, per_row_bytes * tr + (4 << 20))))

    if group > 1:
        kernel = functools.partial(_layernorm_grouped_kernel, eps=eps,
                                   hidden=H, group=group)
    else:
        # Production shapes should keep H a multiple of 128 here so stores are
        # lane-dense; small H that divides 128 takes the grouped path above.
        kernel = functools.partial(_layernorm_kernel, eps=eps, hidden=H)

    out = pl.pallas_call(
        kernel,
        out_shape=jax.ShapeDtypeStruct((rows2, H2), x.dtype),
        grid_spec=pl.GridSpec(
            grid=grid,
            in_specs=[
                pl.BlockSpec((tr, H2), lambda i: (i, 0)),
                pl.BlockSpec((1, H2), lambda i: (0, 0)),
                pl.BlockSpec((1, H2), lambda i: (0, 0)),
            ],
            out_specs=pl.BlockSpec((tr, H2), lambda i: (i, 0)),
        ),
        compiler_params=pltpu.CompilerParams(
            # TODO(synk): verify with xprof that the 1-D "parallel" grid is
            # sharded across both v7x TensorCores; if not, add a leading
            # CORE_PARALLEL axis of size num_cores and split rows over it.
            dimension_semantics=("parallel",),
            vmem_limit_bytes=vmem_limit_bytes,
        ),
    )(x2, gamma2, beta2)
    return out.reshape(B, S, H)


def layer_norm_reference(x, gamma, beta, eps=1e-5):
    xf = x.astype(jnp.float32)
    mean = jnp.mean(xf, axis=-1, keepdims=True)
    var = jnp.mean((xf - mean) ** 2, axis=-1, keepdims=True)
    std = jnp.sqrt(var + eps)
    y = (xf - mean) / std
    return (gamma * y + beta).astype(x.dtype)


if __name__ == "__main__":
    # Deterministic small example: batch=2, seq=8, hidden=32
    B, S, H = 2, 8, 32
    key = jax.random.PRNGKey(0)
    x = jax.random.normal(key, (B, S, H), dtype=jnp.float32)

    # Parameters as in nn.Module __init__: gamma=ones, beta=zeros, shape=(hidden,)
    gamma = jnp.ones((H,), dtype=jnp.float32)
    beta = jnp.zeros((H,), dtype=jnp.float32)

    # Exercises the lane-dense grouped path (H=32 -> G=4, rows%G==0).
    out = layer_norm(x, gamma, beta, eps=1e-5)
    out = jax.block_until_ready(out)

    ref = layer_norm_reference(x, gamma, beta, eps=1e-5)
    assert out.shape == x.shape and out.dtype == x.dtype
    assert jnp.allclose(out, ref, atol=1e-5, rtol=1e-5)

    # Non-divisible rows: exercises the standard path with a masked final tile
    # and the sublane-aligned manual tile_rows override.
    B2, S2 = 3, 7
    x2 = jax.random.normal(jax.random.PRNGKey(1), (B2, S2, H), dtype=jnp.float32)
    out2 = jax.block_until_ready(layer_norm(x2, gamma, beta, eps=1e-5, tile_rows=8))
    ref2 = layer_norm_reference(x2, gamma, beta, eps=1e-5)
    assert jnp.allclose(out2, ref2, atol=1e-5, rtol=1e-5)

    print("KERNEL_OK")
</pallas_src>

<mosaic_0001>
module attributes {stable_mosaic.version = 11 : i64} {
  func.func @_layernorm_grouped_kernel(%arg0: i32, %arg1: memref<4x128xf32, #tpu.memory_space<vmem>>, %arg2: memref<1x128xf32, #tpu.memory_space<vmem>>, %arg3: memref<1x128xf32, #tpu.memory_space<vmem>>, %arg4: memref<4x128xf32, #tpu.memory_space<vmem>>) attributes {dimension_semantics = [#tpu.dimension_semantics<parallel>], iteration_bounds = array<i64: 1>, scalar_prefetch = 0 : i64, scratch_operands = 0 : i64, tpu.core_type = #tpu.core_type<tc>, window_params = [{transform_indices = @transform_0, window_bounds = array<i64: 4, 128>}, {pipeline_mode = #tpu.pipeline_mode<synchronous>, transform_indices = @transform_1, window_bounds = array<i64: 1, 128>}, {pipeline_mode = #tpu.pipeline_mode<synchronous>, transform_indices = @transform_2, window_bounds = array<i64: 1, 128>}, {transform_indices = @transform_3, window_bounds = array<i64: 4, 128>}]} {
    %c0 = arith.constant 0 : index
    %c0_0 = arith.constant 0 : index
    %0 = vector.load %arg1[%c0, %c0_0] : memref<4x128xf32, #tpu.memory_space<vmem>>, vector<4x128xf32>
    %1 = vector.shape_cast %0 : vector<4x128xf32> to vector<4x4x32xf32>
    %cst = arith.constant dense<0.000000e+00> : vector<4x4xf32>
    %2 = vector.multi_reduction <add>, %1, %cst [2] : vector<4x4x32xf32> to vector<4x4xf32>
    %3 = vector.shape_cast %2 : vector<4x4xf32> to vector<4x4x1xf32>
    %4 = arith.mulf %1, %1 : vector<4x4x32xf32>
    %cst_1 = arith.constant dense<0.000000e+00> : vector<4x4xf32>
    %5 = vector.multi_reduction <add>, %4, %cst_1 [2] : vector<4x4x32xf32> to vector<4x4xf32>
    %6 = vector.shape_cast %5 : vector<4x4xf32> to vector<4x4x1xf32>
    %cst_2 = arith.constant 3.125000e-02 : f32
    %7 = vector.broadcast %cst_2 : f32 to vector<4x4x1xf32>
    %8 = arith.mulf %3, %7 : vector<4x4x1xf32>
    %cst_3 = arith.constant 3.125000e-02 : f32
    %9 = vector.broadcast %cst_3 : f32 to vector<4x4x1xf32>
    %10 = arith.mulf %6, %9 : vector<4x4x1xf32>
    %11 = arith.mulf %8, %8 : vector<4x4x1xf32>
    %12 = arith.subf %10, %11 : vector<4x4x1xf32>
    %cst_4 = arith.constant 0.000000e+00 : f32
    %13 = vector.broadcast %cst_4 : f32 to vector<4x4x1xf32>
    %14 = arith.maximumf %12, %13 : vector<4x4x1xf32>
    %cst_5 = arith.constant 9.99999974E-6 : f32
    %15 = vector.broadcast %cst_5 : f32 to vector<4x4x1xf32>
    %16 = arith.addf %14, %15 : vector<4x4x1xf32>
    %17 = math.rsqrt %16 : vector<4x4x1xf32>
    %18 = vector.broadcast %8 : vector<4x4x1xf32> to vector<4x4x32xf32>
    %19 = arith.subf %1, %18 : vector<4x4x32xf32>
    %20 = vector.broadcast %17 : vector<4x4x1xf32> to vector<4x4x32xf32>
    %21 = arith.mulf %19, %20 : vector<4x4x32xf32>
    %22 = vector.shape_cast %21 : vector<4x4x32xf32> to vector<4x128xf32>
    %c0_6 = arith.constant 0 : index
    %c0_7 = arith.constant 0 : index
    %23 = vector.load %arg2[%c0_6, %c0_7] : memref<1x128xf32, #tpu.memory_space<vmem>>, vector<1x128xf32>
    %c0_8 = arith.constant 0 : index
    %c0_9 = arith.constant 0 : index
    %24 = vector.load %arg3[%c0_8, %c0_9] : memref<1x128xf32, #tpu.memory_space<vmem>>, vector<1x128xf32>
    %25 = vector.broadcast %23 : vector<1x128xf32> to vector<4x128xf32>
    %26 = arith.mulf %22, %25 : vector<4x128xf32>
    %27 = vector.broadcast %24 : vector<1x128xf32> to vector<4x128xf32>
    %28 = arith.addf %26, %27 : vector<4x128xf32>
    %c0_10 = arith.constant 0 : index
    %c0_11 = arith.constant 0 : index
    %29 = vector.load %arg4[%c0_10, %c0_11] : memref<4x128xf32, #tpu.memory_space<vmem>>, vector<4x128xf32>
    tpu.vector_store %arg4[%c0_10, %c0_11], %28 {strides = array<i32>} : memref<4x128xf32, #tpu.memory_space<vmem>>, vector<4x128xf32>,
    return
  }
  func.func @transform_0(%arg0: i32) -> (i32, i32) {
    %c0_i32 = arith.constant 0 : i32
    %c0_i32_0 = arith.constant 0 : i32
    return %arg0, %c0_i32 : i32, i32
  }
  func.func @transform_1(%arg0: i32) -> (i32, i32) {
    %c0_i32 = arith.constant 0 : i32
    %c0_i32_0 = arith.constant 0 : i32
    %c0_i32_1 = arith.constant 0 : i32
    return %c0_i32, %c0_i32_0 : i32, i32
  }
  func.func @transform_2(%arg0: i32) -> (i32, i32) {
    %c0_i32 = arith.constant 0 : i32
    %c0_i32_0 = arith.constant 0 : i32
    %c0_i32_1 = arith.constant 0 : i32
    return %c0_i32, %c0_i32_0 : i32, i32
  }
  func.func @transform_3(%arg0: i32) -> (i32, i32) {
    %c0_i32 = arith.constant 0 : i32
    %c0_i32_0 = arith.constant 0 : i32
    return %arg0, %c0_i32 : i32, i32
  }
}

</mosaic_0001>

<bundles_post_ra>
// kernel: tpu_custom_call.1
= control target key start
LH: loop header
LB: loop body
LE: loop exit
PB: predicated region body
PF: predicated region fallthrough
CT: control target
= control target key end

     0   :  { %8 = vsyncpa [#allocation3], 0  ;;  %s401_s0 = inlined_call_operand.hbm [shape: f32[4,128], index: 0, kind: input, shape index: {}]   ;;  %s402_s1 = inlined_call_operand.vmem [shape: f32[1,128], index: 1, kind: input, shape index: {}]   ;;  %s403_s2 = inlined_call_operand.vmem [shape: f32[1,128], index: 2, kind: input, shape index: {}]   ;;  %s404_s3 = inlined_call_operand.hbm [shape: f32[4,128], index: 3, kind: output, shape index: {}]  }
   0x1   :  { %9 = vsyncpa [#allocation4], 0  ;;  %s287_s12 = smov [#allocation2]   ;;  %s239_s16 = scalar_lea.hbm %s401_s0, 64 }
   0x2   :  { %s16_s13 = sshll.u32 %s287_s12, 4  ;;  %p240_p0 = scmp.ne.s32.totalorder %s401_s0, %s239_s16  ;;  %s17_s13 = int_to_ptr.vmem [resolvable:$true] %s16_s13 }
   0x3   :  { %p243_p1 = scmp.lt.u32.totalorder %s239_s16, %s401_s0 }
   0x5   :  { %p245_p2 = pnand %p243_p1, %p240_p0 }
   0x7   :  { %248 = shalt.err (!%p245_p2)
}
   0x8   :  { %s249_s21 = scalar_lea.vmem %s17_s13, 64  ;;  %p254_p4 = scmp.lt.s32.totalorder %s17_s13, %s17_s13 }
   0x9   :  { %p250_p3 = scmp.ne.s32.totalorder %s17_s13, %s249_s21  ;;  %p255_p5 = scmp.lt.s32.totalorder %s249_s21, %s249_s21 }
   0xb   :  { %p256_p6 = por %p255_p5, %p254_p4 }
   0xd   :  { %p257_p7 = pnand %p256_p6, %p250_p3 }
   0xf   :  { %260 = shalt.err (!%p257_p7)
}
  0x10   :  { %19 = dma.hbm_to_vmem [thread:$0]  %s401_s0, 64, %s17_s13, [#allocation3]  }
  0x11   :  { %283 = dma.done.wait [#allocation3], 64  }
  0x12   :  { %284 = vsyncadd [#allocation3], 4294967232  ;;  %v27_v0 = vld [vmem:[#allocation2] sm:$0xf]  ;;  %s288_s24 = smov 32   ;;  %s289_s25 = smov 96   ;;  %v42_v3 = vlaneseq }
  0x13   :  { %35 = vrot.lane.b32.xlu1 %v27_v0, %s288_s24  ;;  %29 = vrot.lane.b32.xlu0 %v27_v0, %s289_s25  ;;  %s290_s26 = smov 64   ;;  %v291_v1 = vmov 1983009808   ;;  %v292_v6 = vmov 1934713408   ;;  %vm72_vm0 = vcmask 257024  }
  0x14   :  { %v40_v2 = vunpack.c.l.s4 %v291_v1  ;;  %v43_v5 = vshrl.u32 %v42_v3, 7  ;;  %v57_v7 = vunpack.c.l.s4 %v292_v6  ;;  %v293_v24 = vmov 0.0   ;;  %s294_s30 = smov [#allocation5]  }
  0x15   :  { %vm183_vm1 = vcmask 261120   ;;  %vm185_vm2 = vcmask 523264   ;;  %vm187_vm3 = vcmask 785408   ;;  %s212_s4 = sshll.u32 %s294_s30, 4  ;;  %s213_s4 = int_to_ptr.vmem [resolvable:$true] %s212_s4 }
  0x16   :  { %v41_v4 = vunpack.c.0.s8 %v40_v2  ;;  %v58_v12 = vunpack.c.0.s8 %v57_v7  ;;  %s261_s5 = scalar_lea.vmem %s213_s4, 64  ;;  %p266_p9 = scmp.lt.s32.totalorder %s213_s4, %s213_s4 }
  0x17   :  { %32 = vrot.lane.b32.xlu0 %v27_v0, %s290_s26  ;;  %p262_p8 = scmp.ne.s32.totalorder %s213_s4, %s261_s5  ;;  %p267_p10 = scmp.lt.s32.totalorder %s261_s5, %s261_s5 }
  0x18   :  { %v330_v10 = vsub.s32 %v41_v4, %v43_v5  ;;  %v333_v16 = vsub.s32 %v58_v12, %v43_v5 }
  0x19   :  { %p268_p11 = por %p267_p10, %p266_p9 }
  0x1b   :  { %p269_p12 = pnand %p268_p11, %p262_p8 }
  0x85   :  { %v36_v8 = vpop.permute.xlu1 %35  ;;  %v30_v9 = vpop.permute.xlu0 %29 }
  0x86   :  { %v46_v11 = vcombine.low %v30_v9, %v36_v8 }
  0x88   :  { %v53_v15 = vrot.slane %v46_v11, %v330_v10 }
  0x89   :  { %v33_v13 = vpop.permute.xlu0 %32 }
  0x8a   :  { %v38_v14 = vcombine.low %v27_v0, %v33_v13 }
  0x8c   :  { %v45_v17 = vrot.slane %v38_v14, %v330_v10 }
  0x8e   :  { %v54_v18 = vcombine.low %v45_v17, %v53_v15  ;;  %v55_v19 = vcombine.high %v45_v17, %v53_v15 }
  0x90   :  { %v337_v20 = vrot.slane %v54_v18, %v333_v16  ;;  %v340_v21 = vrot.slane %v55_v19, %v333_v16 }
  0x92   :  { %v79_v22 = vsel %vm72_vm0, %v340_v21, 0.0  ;;  %v73_v23 = vsel %vm72_vm0, %v337_v20, 0.0  ;;  %v348_v25 = vcombine.high %v340_v21, %v293_v24  ;;  %v352_v26 = vcombine.high %v337_v20, %v293_v24 }
  0x93   :  { %80 = vadd.xlane.f32.xlu0 %v79_v22  ;;  %74 = vadd.xlane.f32.xlu1 %v73_v23  ;;  %v85_v30 = vmul.f32 %v337_v20, %v337_v20  ;;  %v87_v34 = vmul.f32 %v340_v21, %v340_v21 }
  0x94   :  { %v82_v27 = vsel %vm72_vm0, %v348_v25, 0.0  ;;  %v76_v28 = vsel %vm72_vm0, %v352_v26, 0.0  ;;  %v86_v29 = vmul.f32 %v352_v26, %v352_v26  ;;  %v88_v33 = vmul.f32 %v348_v25, %v348_v25 }
  0x95   :  { %v89_v32 = vsel %vm72_vm0, %v85_v30, 0.0  ;;  %v95_v36 = vsel %vm72_vm0, %v87_v34, 0.0 }
  0x96   :  { %v92_v31 = vsel %vm72_vm0, %v86_v29, 0.0  ;;  %v98_v35 = vsel %vm72_vm0, %v88_v33, 0.0 }
  0x97   :  { %83 = vadd.xlane.f32.xlu1 %v82_v27  ;;  %77 = vadd.xlane.f32.xlu0 %v76_v28 }
  0x9b   :  { %93 = vadd.xlane.f32.xlu1 %v92_v31  ;;  %90 = vadd.xlane.f32.xlu0 %v89_v32 }
  0x9f   :  { %99 = vadd.xlane.f32.xlu1 %v98_v35  ;;  %96 = vadd.xlane.f32.xlu0 %v95_v36  ;;  %v222_v35 = vld [vmem:[%s403_s2] ss:$0 sm:$0xff] }
 0x120   :  { %v81_v37 = vpop.xlane.xlu0 %80  ;;  %v75_v38 = vpop.xlane.xlu1 %74 }
 0x121   :  { %v101_v41 = vmul.f32 0.03125, %v75_v38  ;;  %v103_v43 = vmul.f32 0.03125, %v81_v37 }
 0x123   :  { %v109_v47 = vmul.f32 %v101_v41, %v101_v41  ;;  %v111_v53 = vmul.f32 %v103_v43, %v103_v43  ;;  %v131_v11 = vsub.f32 %v340_v21, %v103_v43  ;;  %v129_v12 = vsub.f32 %v337_v20, %v101_v41 }
 0x124   :  { %v84_v39 = vpop.xlane.xlu1 %83  ;;  %v78_v40 = vpop.xlane.xlu0 %77 }
 0x125   :  { %v102_v42 = vmul.f32 0.03125, %v78_v40  ;;  %v104_v44 = vmul.f32 0.03125, %v84_v39 }
 0x127   :  { %v110_v48 = vmul.f32 %v102_v42, %v102_v42  ;;  %v112_v54 = vmul.f32 %v104_v44, %v104_v44  ;;  %v132_v7 = vsub.f32 %v348_v25, %v104_v44  ;;  %v130_v8 = vsub.f32 %v352_v26, %v102_v42 }
 0x128   :  { %v94_v45 = vpop.xlane.xlu1 %93  ;;  %v91_v46 = vpop.xlane.xlu0 %90 }
 0x129   :  { %v106_v49 = vmul.f32 0.03125, %v94_v45  ;;  %v105_v50 = vmul.f32 0.03125, %v91_v46 }
 0x12b   :  { %v114_v51 = vsub.f32 %v106_v49, %v110_v48  ;;  %v113_v52 = vsub.f32 %v105_v50, %v109_v47 }
 0x12c   :  { %v100_v55 = vpop.xlane.xlu1 %99  ;;  %v97_v56 = vpop.xlane.xlu0 %96 }
 0x12d   :  { %v118_v57 = vmax.f32 %v114_v51, 0.0  ;;  %v117_v58 = vmax.f32 %v113_v52, 0.0  ;;  %v108_v59 = vmul.f32 0.03125, %v100_v55  ;;  %v107_v60 = vmul.f32 0.03125, %v97_v56 }
 0x12f   :  { %v122_v61 = vadd.f32 1e-05, %v118_v57  ;;  %v116_v62 = vsub.f32 %v108_v59, %v112_v54  ;;  %v115_v63 = vsub.f32 %v107_v60, %v111_v53  ;;  %v121_v0 = vadd.f32 1e-05, %v117_v58 }
 0x131   :  { %v120_v1 = vmax.f32 %v116_v62, 0.0  ;;  %v119_v2 = vmax.f32 %v115_v63, 0.0  ;;  %231 = vrsqrt.f32 %v122_v61 }
 0x132   :  { %233 = vrsqrt.f32 %v121_v0 }
 0x133   :  { %v124_v3 = vadd.f32 1e-05, %v120_v1  ;;  %v123_v4 = vadd.f32 1e-05, %v119_v2 }
 0x135   :  { %235 = vrsqrt.f32 %v124_v3 }
 0x136   :  { %237 = vrsqrt.f32 %v123_v4 }
 0x13b   :  { %v232_v5 = vpop.eup %231 }
 0x13c   :  { %v234_v6 = vpop.eup %233  ;;  %v134_v14 = vmul.f32 %v232_v5, %v130_v8 }
 0x13d   :  { %v133_v17 = vmul.f32 %v234_v6, %v129_v12 }
 0x13f   :  { %v236_v9 = vpop.eup %235 }
 0x140   :  { %v238_v13 = vpop.eup %237  ;;  %v136_v15 = vmul.f32 %v236_v9, %v132_v7 }
 0x141   :  { %v135_v18 = vmul.f32 %v238_v13, %v131_v11 }
 0x142   :  { %v145_v19 = vcombine.low %v134_v14, %v136_v15 }
 0x143   :  { %v137_v22 = vcombine.low %v133_v17, %v135_v18 }
 0x144   :  { %v152_v23 = vrot.slane %v145_v19, %v330_v10 }
 0x145   :  { %v144_v27 = vrot.slane %v137_v22, %v330_v10 }
 0x147   :  { %v154_v28 = vcombine.high %v144_v27, %v152_v23  ;;  %v153_v25 = vcombine.low %v144_v27, %v152_v23 }
 0x149   :  { %v168_v26 = vrot.slane %v154_v28, %v333_v16  ;;  %v161_v29 = vrot.slane %v153_v25, %v333_v16  ;;  %v221_v16 = vld [vmem:[%s402_s1] ss:$0 sm:$0xff] }
 0x14b   :  { %176 = vrot.lane.b32.xlu1 %v168_v26, %s290_s26  ;;  %v169_v20 = vcombine.high %v161_v29, %v293_v24  ;;  %v170_v21 = vcombine.high %v168_v26, %v293_v24 }
 0x14d   :  { %172 = vrot.lane.b32.xlu0 %v169_v20, %s288_s24 }
 0x14f   :  { %180 = vrot.lane.b32.xlu1 %v170_v21, %s289_s25 }
 0x1bd   :  { %v177_v30 = vpop.permute.xlu1 %176 }
 0x1bf   :  { %v173_v10 = vpop.permute.xlu0 %172 }
 0x1c0   :  { %v184_v31 = vsel %vm183_vm1, %v161_v29, %v173_v10 }
 0x1c1   :  { %v181_v32 = vpop.permute.xlu1 %180  ;;  %v186_v33 = vsel %vm185_vm2, %v184_v31, %v177_v30 }
 0x1c2   :  { %v188_v34 = vsel %vm187_vm3, %v186_v33, %v181_v32 }
 0x1c3   :  { %v197_v24 = vmul.f32 %v221_v16, %v188_v34 }
 0x1c5   :  { %v204_v36 = vadd.f32 %v222_v35, %v197_v24 }
 0x1c7   :  { %205 = vst [vmem:[#allocation5] sm:$0xf] %v204_v36 }
 0x1c8   :  { %272 = shalt.err (!%p269_p12)
}
 0x1c9   :  { %s273_s7 = scalar_lea.hbm %s404_s3, 64 }
 0x1ca   :  { %p274_p13 = scmp.ne.s32.totalorder %s404_s3, %s273_s7  ;;  %p277_p0 = scmp.lt.u32.totalorder %s273_s7, %s404_s3 }
 0x1cc   :  { %p279_p1 = pnand %p277_p0, %p274_p13 }
 0x1ce   :  { %282 = shalt.err (!%p279_p1)
}
 0x1cf   :  { %215 = dma.vmem_to_hbm [thread:$0]  %s213_s4, 64, %s404_s3, [#allocation4]  }
 0x1d0   :  { %285 = dma.done.wait [#allocation4], 64  }
 0x1d1   :  { %286 = vsyncadd [#allocation4], 4294967232 }
 0x1d2   :  { %219 = vsyncpa [#allocation3], 1 }
 0x1d3   :  { %220 = vsyncpa [#allocation4], 1 }

</bundles_post_ra>
